<compile_context>
chip_gen: v7x
topology: tpu7x:2x2x1
jax: 0.10.0
libtpu: 0.0.40
codegen_flags: <defaults>
</compile_context>

<pallas_src>
import math

import jax
import jax.numpy as jnp
from jax.experimental import pallas as pl
from jax.experimental.pallas import tpu as pltpu


def _round_up(x, m):
    return ((x + m - 1) // m) * m


def _cdiv(a, b):
    return (a + b - 1) // b


def _lane_multiple():
    """256 on v6e/v7x (256x256 MXU), 128 on v5e and older / unknown."""
    try:
        kind = jax.devices()[0].device_kind.lower()
    except Exception:
        return 128
    for tag in ("v2", "v3", "v4", "v5"):
        if tag in kind:
            return 128
    return 256


def _vmem_budget():
    """~85% of this generation's VMEM capacity (conservative fallback: v7x)."""
    try:
        cap = int(pltpu.get_tpu_info().vmem_capacity_bytes)
    except Exception:
        cap = 64 << 20
    return int(0.85 * cap)


def _vmem_estimate(tm, th, dp, xb, wb, ob):
    """Resident-VMEM estimate incl. kernel-internal f32 intermediates."""
    est = 0
    est += 2 * tm * dp * xb            # x tile (double-buffered over M)
    est += 2 * tm * dp * ob            # out tile (double-buffered over M)
    est += 2 * dp * th * wb            # W1 tile (double-buffered over H)
    est += 2 * th * dp * wb            # W2 tile
    est += 2 * 8 * (th + dp) * 4       # biases (f32, sublane-padded)
    est += tm * dp * 4                 # f32 accumulator scratch
    # internal: h (f32) + h cast + 2nd matmul result + f32 x copy + y
    est += tm * th * (4 + wb) + 3 * tm * dp * 4
    return est


def bottleneck_kernel(x_ref, w1_ref, b1_ref, w2_ref, b2_ref, o_ref, acc_ref):
    k = pl.program_id(1)

    @pl.when(k == 0)
    def _init():
        acc_ref[...] = jnp.zeros_like(acc_ref)

    x = x_ref[...]                                        # (tm, dp), native dtype
    # Linear 1 (hidden tile): f32 MXU accumulation + f32 bias slice.
    h = jnp.dot(x, w1_ref[...],
                preferred_element_type=jnp.float32) + b1_ref[...]
    # Feed the second matmul in the weight dtype (keeps the bf16 MXU path when
    # weights are bf16; identity for f32).  Mixed precision => slight drift vs
    # an all-f32 reference; callers should compare with a loose tolerance.
    h = h.astype(w2_ref.dtype)
    # Linear 2 (hidden tile): accumulate into the resident f32 output tile.
    acc_ref[...] += jnp.dot(h, w2_ref[...],
                            preferred_element_type=jnp.float32)

    @pl.when(k == pl.num_programs(1) - 1)
    def _finalize():
        y = acc_ref[...] + b2_ref[...]
        o_ref[...] = (x.astype(jnp.float32) + y).astype(o_ref.dtype)


def make_bottleneck_params(w1, b1, w2, b2, *, compute_dtype=None,
                           hidden_tile=512):
    """Pad/transpose the weights ONCE (hoisted out of the per-call path).

    w1: (H, D), b1: (H,)   -- first nn.Linear (PyTorch layout)
    w2: (D, H), b2: (D,)   -- second nn.Linear (PyTorch layout)
    """
    h_dim, d_in = w1.shape
    d_out, h_dim2 = w2.shape
    assert h_dim == h_dim2, "weight shapes inconsistent"
    assert d_in == d_out, "residual requires input_dim == output_dim"

    lane = _lane_multiple()
    budget = _vmem_budget()

    # Feature dims: keep d_in untouched if already lane-aligned (lets the
    # activations skip the pad copy entirely); otherwise pad to the MXU width.
    dp = d_in if d_in % 128 == 0 else _round_up(d_in, lane)
    hp = h_dim if h_dim % 128 == 0 else _round_up(h_dim, lane)

    wdt = compute_dtype if compute_dtype is not None else w1.dtype
    wb = jnp.dtype(wdt).itemsize

    # Hidden tile: multiple of 128, capped so double-buffered W1/W2 tiles use
    # at most ~35% of the VMEM budget (leaves room for x/out/acc tiles).
    th_cap = min(_round_up(hidden_tile, 128), hp)
    while th_cap > 128 and 4 * dp * th_cap * wb > 0.35 * budget:
        th_cap = max(128, ((th_cap // 2) // 128) * 128)
    n_k = _cdiv(hp, th_cap)
    th = _round_up(_cdiv(hp, n_k), 128)
    hp = th * n_k                       # th divides hp; padding is zero (inert)

    w1_t = jnp.zeros((dp, hp), wdt).at[:d_in, :h_dim].set(w1.T.astype(wdt))
    w2_t = jnp.zeros((hp, dp), wdt).at[:h_dim, :d_out].set(w2.T.astype(wdt))
    b1_p = jnp.zeros((1, hp), jnp.float32).at[0, :h_dim].set(
        b1.astype(jnp.float32))
    b2_p = jnp.zeros((1, dp), jnp.float32).at[0, :d_out].set(
        b2.astype(jnp.float32))

    return dict(w1=w1_t, b1=b1_p, w2=w2_t, b2=b2_p,
                d_in=d_in, d_out=d_out, h_dim=h_dim,
                dp=dp, hp=hp, th=th,
                compute_dtype=compute_dtype, budget=budget)


def bottleneck_apply(x, params, *, tm=512):
    """Apply the Bottleneck forward using pre-prepared params."""
    d_in, d_out = params["d_in"], params["d_out"]
    dp, hp, th = params["dp"], params["hp"], params["th"]
    budget = params["budget"]
    cdt = params["compute_dtype"]

    orig_shape = x.shape
    out_dtype = x.dtype
    assert orig_shape[-1] == d_in

    x2d = x.reshape(-1, d_in)
    if cdt is not None:
        x2d = x2d.astype(cdt)
    m = x2d.shape[0]

    if d_in % 128 == 0:
        # No pad copy, no output slice: partial last row tile is handled by the
        # pipeline (row-wise math, so stale edge rows never touch valid rows).
        x_p = x2d
        m_rows = m
    else:
        # Column pad is unavoidable; pad rows only to a multiple of 8 (zeros,
        # so padded columns never meet garbage).
        m_rows = _round_up(m, 8)
        x_p = jnp.zeros((m_rows, dp), x2d.dtype).at[:m, :d_in].set(x2d)

    xb = jnp.dtype(x_p.dtype).itemsize
    wb = jnp.dtype(params["w1"].dtype).itemsize
    ob = jnp.dtype(out_dtype).itemsize

    # Row tile: as large as fits, multiple of 8, shrunk to fit the VMEM budget.
    tm = max(8, min((tm // 8) * 8, _round_up(m_rows, 8)))
    while tm > 8 and _vmem_estimate(tm, th, dp, xb, wb, ob) > budget:
        tm = max(8, ((tm // 2) // 8) * 8)
    # Prefer >= 4 row tiles (pipelining + v7x two-core sharding) when tiles
    # stay reasonably large.
    if _cdiv(m_rows, tm) < 4:
        tm4 = _round_up(_cdiv(m_rows, 4), 8)
        if tm4 >= 128:
            tm = min(tm, tm4)

    n_m = _cdiv(m_rows, tm)
    n_k = hp // th
    est = _vmem_estimate(tm, th, dp, xb, wb, ob)

    cp_kwargs = dict(dimension_semantics=("parallel", "arbitrary"))
    if est > (24 << 20):
        cp_kwargs["vmem_limit_bytes"] = int(max(budget, 32 << 20))

    try:
        cost = pl.CostEstimate(
            flops=4 * m_rows * dp * hp,
            transcendentals=0,
            bytes_accessed=int(m_rows * dp * (xb + ob)
                               + 2 * dp * hp * wb + (hp + dp) * 4))
    except Exception:
        cost = None

    def _call(single_buffer_weights):
        wkw = (dict(pipeline_mode=pl.Buffered(1))
               if single_buffer_weights else {})
        in_specs = [
            pl.BlockSpec((tm, dp), lambda i, k: (i, 0)),          # x tile
            pl.BlockSpec((dp, th), lambda i, k: (0, k), **wkw),   # W1^T tile
            pl.BlockSpec((1, th), lambda i, k: (0, k), **wkw),    # b1 tile
            pl.BlockSpec((th, dp), lambda i, k: (k, 0), **wkw),   # W2^T tile
            pl.BlockSpec((1, dp), lambda i, k: (0, 0), **wkw),    # b2
        ]
        return pl.pallas_call(
            bottleneck_kernel,
            out_shape=jax.ShapeDtypeStruct((m_rows, dp), out_dtype),
            grid_spec=pltpu.PrefetchScalarGridSpec(
                num_scalar_prefetch=0,
                grid=(n_m, n_k),
                in_specs=in_specs,
                out_specs=pl.BlockSpec((tm, dp), lambda i, k: (i, 0)),
                scratch_shapes=[pltpu.VMEM((tm, dp), jnp.float32)],
            ),
            compiler_params=pltpu.CompilerParams(**cp_kwargs),
            cost_estimate=cost,
        )(x_p, params["w1"], params["b1"], params["w2"], params["b2"])

    if n_k == 1:
        # Weights/biases are never re-fetched; single-buffering halves their
        # VMEM footprint.  Fall back if the runtime rejects buffer_count=1.
        try:
            out_p = _call(True)
        except Exception:
            out_p = _call(False)
    else:
        out_p = _call(False)

    if m_rows != m or dp != d_out:
        out_p = out_p[:m, :d_out]
    return out_p.reshape(orig_shape[:-1] + (d_out,))


def bottleneck_forward(x, w1, b1, w2, b2, *, tm=512, compute_dtype=None):
    """Convenience one-shot wrapper (prepares params every call)."""
    params = make_bottleneck_params(w1, b1, w2, b2, compute_dtype=compute_dtype)
    return bottleneck_apply(x, params, tm=tm)


def init_linear(key, in_dim, out_dim):
    """Deterministic PyTorch-style Linear init: U(-1/sqrt(in), 1/sqrt(in))."""
    kw, kb = jax.random.split(key)
    bound = 1.0 / math.sqrt(in_dim)
    w = jax.random.uniform(kw, (out_dim, in_dim), jnp.float32, -bound, bound)
    b = jax.random.uniform(kb, (out_dim,), jnp.float32, -bound, bound)
    return w, b


if __name__ == "__main__":
    # Small shapes consistent with the module (residual => input_dim == output_dim).
    batch, seq = 2, 8
    input_dim, hidden_dim, output_dim = 32, 16, 32

    key = jax.random.PRNGKey(0)
    kx, k1, k2 = jax.random.split(key, 3)

    x = jax.random.normal(kx, (batch, seq, input_dim), jnp.float32)
    w1, b1 = init_linear(k1, input_dim, hidden_dim)    # (H, D), (H,)
    w2, b2 = init_linear(k2, hidden_dim, output_dim)   # (D, H), (D,)

    # Pure-JAX reference (same math as the PyTorch forward).
    ref = x + ((x @ w1.T + b1) @ w2.T + b2)

    # f32 path (weights prepared once, applied separately).
    params = make_bottleneck_params(w1, b1, w2, b2)
    out = bottleneck_apply(x, params, tm=512)
    jax.block_until_ready(out)
    assert out.shape == ref.shape
    assert jnp.allclose(out, ref, atol=1e-5, rtol=1e-5), "f32 mismatch vs reference"

    # bf16 compute path (mixed precision: loose tolerance by design).
    params_bf16 = make_bottleneck_params(w1, b1, w2, b2,
                                         compute_dtype=jnp.bfloat16)
    out_bf16 = bottleneck_apply(x, params_bf16)
    jax.block_until_ready(out_bf16)
    assert out_bf16.shape == ref.shape
    assert jnp.allclose(out_bf16, ref, atol=1e-1, rtol=5e-2), "bf16 mismatch vs reference"

    print("KERNEL_OK")
</pallas_src>

<mosaic_0001>
module attributes {stable_mosaic.version = 11 : i64} {
  func.func @bottleneck_kernel(%arg0: i32, %arg1: i32, %arg2: memref<16x256xf32, #tpu.memory_space<vmem>>, %arg3: memref<256x256xf32, #tpu.memory_space<vmem>>, %arg4: memref<1x256xf32, #tpu.memory_space<vmem>>, %arg5: memref<256x256xf32, #tpu.memory_space<vmem>>, %arg6: memref<1x256xf32, #tpu.memory_space<vmem>>, %arg7: memref<16x256xf32, #tpu.memory_space<vmem>>, %arg8: memref<16x256xf32, #tpu.memory_space<vmem>>) attributes {dimension_semantics = [#tpu.dimension_semantics<parallel>, #tpu.dimension_semantics<arbitrary>], iteration_bounds = array<i64: 1, 1>, scalar_prefetch = 0 : i64, scratch_operands = 1 : i64, tpu.core_type = #tpu.core_type<tc>, window_params = [{transform_indices = @transform_0, window_bounds = array<i64: 16, 256>}, {pipeline_mode = #tpu.pipeline_mode<synchronous>, transform_indices = @transform_1, window_bounds = array<i64: 256, 256>}, {pipeline_mode = #tpu.pipeline_mode<synchronous>, transform_indices = @transform_2, window_bounds = array<i64: 1, 256>}, {pipeline_mode = #tpu.pipeline_mode<synchronous>, transform_indices = @transform_3, window_bounds = array<i64: 256, 256>}, {pipeline_mode = #tpu.pipeline_mode<synchronous>, transform_indices = @transform_4, window_bounds = array<i64: 1, 256>}, {transform_indices = @transform_5, window_bounds = array<i64: 16, 256>}]} {
    %c0_i32 = arith.constant 0 : i32
    %0 = arith.cmpi eq, %arg1, %c0_i32 : i32
    %1 = arith.extui %0 : i1 to i32
    %c0_i32_0 = arith.constant 0 : i32
    %2 = arith.cmpi ne, %1, %c0_i32_0 : i32
    scf.if %2 {
      %cst_15 = arith.constant 0.000000e+00 : f32
      %17 = vector.broadcast %cst_15 : f32 to vector<16x256xf32>
      %c0_16 = arith.constant 0 : index
      %c0_17 = arith.constant 0 : index
      %18 = vector.load %arg8[%c0_16, %c0_17] : memref<16x256xf32, #tpu.memory_space<vmem>>, vector<16x256xf32>
      tpu.vector_store %arg8[%c0_16, %c0_17], %17 {strides = array<i32>} : memref<16x256xf32, #tpu.memory_space<vmem>>, vector<16x256xf32>,
    } else {
    }
    %c0 = arith.constant 0 : index
    %c0_1 = arith.constant 0 : index
    %3 = vector.load %arg2[%c0, %c0_1] : memref<16x256xf32, #tpu.memory_space<vmem>>, vector<16x256xf32>
    %c0_2 = arith.constant 0 : index
    %c0_3 = arith.constant 0 : index
    %4 = vector.load %arg3[%c0_2, %c0_3] : memref<256x256xf32, #tpu.memory_space<vmem>>, vector<256x256xf32>
    %cst = arith.constant dense<0.000000e+00> : vector<16x256xf32>
    %5 = tpu.matmul %3, %4, %cst {dimension_numbers = #tpu.dot_dimension_numbers<[1], [0], [0], [1], [0, 0, 1, 1], [], []>} : vector<16x256xf32>, vector<256x256xf32>, vector<16x256xf32> -> vector<16x256xf32>
    %c0_4 = arith.constant 0 : index
    %c0_5 = arith.constant 0 : index
    %6 = vector.load %arg4[%c0_4, %c0_5] : memref<1x256xf32, #tpu.memory_space<vmem>>, vector<1x256xf32>
    %7 = vector.broadcast %6 : vector<1x256xf32> to vector<16x256xf32>
    %8 = arith.addf %5, %7 : vector<16x256xf32>
    %c0_6 = arith.constant 0 : index
    %c0_7 = arith.constant 0 : index
    %9 = vector.load %arg8[%c0_6, %c0_7] : memref<16x256xf32, #tpu.memory_space<vmem>>, vector<16x256xf32>
    %c0_8 = arith.constant 0 : index
    %c0_9 = arith.constant 0 : index
    %10 = vector.load %arg5[%c0_8, %c0_9] : memref<256x256xf32, #tpu.memory_space<vmem>>, vector<256x256xf32>
    %cst_10 = arith.constant dense<0.000000e+00> : vector<16x256xf32>
    %11 = tpu.matmul %8, %10, %cst_10 {dimension_numbers = #tpu.dot_dimension_numbers<[1], [0], [0], [1], [0, 0, 1, 1], [], []>} : vector<16x256xf32>, vector<256x256xf32>, vector<16x256xf32> -> vector<16x256xf32>
    %12 = arith.addf %9, %11 : vector<16x256xf32>
    %c0_11 = arith.constant 0 : index
    %c0_12 = arith.constant 0 : index
    %13 = vector.load %arg8[%c0_11, %c0_12] : memref<16x256xf32, #tpu.memory_space<vmem>>, vector<16x256xf32>
    tpu.vector_store %arg8[%c0_11, %c0_12], %12 {strides = array<i32>} : memref<16x256xf32, #tpu.memory_space<vmem>>, vector<16x256xf32>,
    %c0_i32_13 = arith.constant 0 : i32
    %14 = arith.cmpi eq, %arg1, %c0_i32_13 : i32
    %15 = arith.extui %14 : i1 to i32
    %c0_i32_14 = arith.constant 0 : i32
    %16 = arith.cmpi ne, %15, %c0_i32_14 : i32
    scf.if %16 {
      %c0_15 = arith.constant 0 : index
      %c0_16 = arith.constant 0 : index
      %17 = vector.load %arg8[%c0_15, %c0_16] : memref<16x256xf32, #tpu.memory_space<vmem>>, vector<16x256xf32>
      %c0_17 = arith.constant 0 : index
      %c0_18 = arith.constant 0 : index
      %18 = vector.load %arg6[%c0_17, %c0_18] : memref<1x256xf32, #tpu.memory_space<vmem>>, vector<1x256xf32>
      %19 = vector.broadcast %18 : vector<1x256xf32> to vector<16x256xf32>
      %20 = arith.addf %17, %19 : vector<16x256xf32>
      %21 = arith.addf %3, %20 : vector<16x256xf32>
      %c0_19 = arith.constant 0 : index
      %c0_20 = arith.constant 0 : index
      %22 = vector.load %arg7[%c0_19, %c0_20] : memref<16x256xf32, #tpu.memory_space<vmem>>, vector<16x256xf32>
      tpu.vector_store %arg7[%c0_19, %c0_20], %21 {strides = array<i32>} : memref<16x256xf32, #tpu.memory_space<vmem>>, vector<16x256xf32>,
    } else {
    }
    return
  }
  func.func @transform_0(%arg0: i32, %arg1: i32) -> (i32, i32) {
    %c0_i32 = arith.constant 0 : i32
    %c0_i32_0 = arith.constant 0 : i32
    return %arg0, %c0_i32 : i32, i32
  }
  func.func @transform_1(%arg0: i32, %arg1: i32) -> (i32, i32) {
    %c0_i32 = arith.constant 0 : i32
    %c0_i32_0 = arith.constant 0 : i32
    return %c0_i32, %arg1 : i32, i32
  }
  func.func @transform_2(%arg0: i32, %arg1: i32) -> (i32, i32) {
    %c0_i32 = arith.constant 0 : i32
    %c0_i32_0 = arith.constant 0 : i32
    return %c0_i32, %arg1 : i32, i32
  }
  func.func @transform_3(%arg0: i32, %arg1: i32) -> (i32, i32) {
    %c0_i32 = arith.constant 0 : i32
    %c0_i32_0 = arith.constant 0 : i32
    return %arg1, %c0_i32 : i32, i32
  }
  func.func @transform_4(%arg0: i32, %arg1: i32) -> (i32, i32) {
    %c0_i32 = arith.constant 0 : i32
    %c0_i32_0 = arith.constant 0 : i32
    %c0_i32_1 = arith.constant 0 : i32
    return %c0_i32, %c0_i32_0 : i32, i32
  }
  func.func @transform_5(%arg0: i32, %arg1: i32) -> (i32, i32) {
    %c0_i32 = arith.constant 0 : i32
    %c0_i32_0 = arith.constant 0 : i32
    return %arg0, %c0_i32 : i32, i32
  }
}

module attributes {stable_mosaic.version = 11 : i64} {
  func.func @bottleneck_kernel(%arg0: i32, %arg1: i32, %arg2: memref<16x256xf32, #tpu.memory_space<vmem>>, %arg3: memref<256x256xf32, #tpu.memory_space<vmem>>, %arg4: memref<1x256xf32, #tpu.memory_space<vmem>>, %arg5: memref<256x256xf32, #tpu.memory_space<vmem>>, %arg6: memref<1x256xf32, #tpu.memory_space<vmem>>, %arg7: memref<16x256xf32, #tpu.memory_space<vmem>>, %arg8: memref<16x256xf32, #tpu.memory_space<vmem>>) attributes {dimension_semantics = [#tpu.dimension_semantics<parallel>, #tpu.dimension_semantics<arbitrary>], iteration_bounds = array<i64: 1, 1>, scalar_prefetch = 0 : i64, scratch_operands = 1 : i64, tpu.core_type = #tpu.core_type<tc>, window_params = [{transform_indices = @transform_0, window_bounds = array<i64: 16, 256>}, {transform_indices = @transform_1, window_bounds = array<i64: 256, 256>}, {transform_indices = @transform_2, window_bounds = array<i64: 1, 256>}, {transform_indices = @transform_3, window_bounds = array<i64: 256, 256>}, {pipeline_mode = #tpu.pipeline_mode<synchronous>, transform_indices = @transform_4, window_bounds = array<i64: 1, 256>}, {transform_indices = @transform_5, window_bounds = array<i64: 16, 256>}]} {
    %c0_i32 = arith.constant 0 : i32
    %0 = arith.cmpi eq, %arg1, %c0_i32 : i32
    %1 = arith.extui %0 : i1 to i32
    %c0_i32_0 = arith.constant 0 : i32
    %2 = arith.cmpi ne, %1, %c0_i32_0 : i32
    scf.if %2 {
      %cst_15 = arith.constant 0.000000e+00 : f32
      %17 = vector.broadcast %cst_15 : f32 to vector<16x256xf32>
      %c0_16 = arith.constant 0 : index
      %c0_17 = arith.constant 0 : index
      %18 = vector.load %arg8[%c0_16, %c0_17] : memref<16x256xf32, #tpu.memory_space<vmem>>, vector<16x256xf32>
      tpu.vector_store %arg8[%c0_16, %c0_17], %17 {strides = array<i32>} : memref<16x256xf32, #tpu.memory_space<vmem>>, vector<16x256xf32>,
    } else {
    }
    %c0 = arith.constant 0 : index
    %c0_1 = arith.constant 0 : index
    %3 = vector.load %arg2[%c0, %c0_1] : memref<16x256xf32, #tpu.memory_space<vmem>>, vector<16x256xf32>
    %c0_2 = arith.constant 0 : index
    %c0_3 = arith.constant 0 : index
    %4 = vector.load %arg3[%c0_2, %c0_3] : memref<256x256xf32, #tpu.memory_space<vmem>>, vector<256x256xf32>
    %cst = arith.constant dense<0.000000e+00> : vector<16x256xf32>
    %5 = tpu.matmul %3, %4, %cst {dimension_numbers = #tpu.dot_dimension_numbers<[1], [0], [0], [1], [0, 0, 1, 1], [], []>} : vector<16x256xf32>, vector<256x256xf32>, vector<16x256xf32> -> vector<16x256xf32>
    %c0_4 = arith.constant 0 : index
    %c0_5 = arith.constant 0 : index
    %6 = vector.load %arg4[%c0_4, %c0_5] : memref<1x256xf32, #tpu.memory_space<vmem>>, vector<1x256xf32>
    %7 = vector.broadcast %6 : vector<1x256xf32> to vector<16x256xf32>
    %8 = arith.addf %5, %7 : vector<16x256xf32>
    %c0_6 = arith.constant 0 : index
    %c0_7 = arith.constant 0 : index
    %9 = vector.load %arg8[%c0_6, %c0_7] : memref<16x256xf32, #tpu.memory_space<vmem>>, vector<16x256xf32>
    %c0_8 = arith.constant 0 : index
    %c0_9 = arith.constant 0 : index
    %10 = vector.load %arg5[%c0_8, %c0_9] : memref<256x256xf32, #tpu.memory_space<vmem>>, vector<256x256xf32>
    %cst_10 = arith.constant dense<0.000000e+00> : vector<16x256xf32>
    %11 = tpu.matmul %8, %10, %cst_10 {dimension_numbers = #tpu.dot_dimension_numbers<[1], [0], [0], [1], [0, 0, 1, 1], [], []>} : vector<16x256xf32>, vector<256x256xf32>, vector<16x256xf32> -> vector<16x256xf32>
    %12 = arith.addf %9, %11 : vector<16x256xf32>
    %c0_11 = arith.constant 0 : index
    %c0_12 = arith.constant 0 : index
    %13 = vector.load %arg8[%c0_11, %c0_12] : memref<16x256xf32, #tpu.memory_space<vmem>>, vector<16x256xf32>
    tpu.vector_store %arg8[%c0_11, %c0_12], %12 {strides = array<i32>} : memref<16x256xf32, #tpu.memory_space<vmem>>, vector<16x256xf32>,
    %c0_i32_13 = arith.constant 0 : i32
    %14 = arith.cmpi eq, %arg1, %c0_i32_13 : i32
    %15 = arith.extui %14 : i1 to i32
    %c0_i32_14 = arith.constant 0 : i32
    %16 = arith.cmpi ne, %15, %c0_i32_14 : i32
    scf.if %16 {
      %c0_15 = arith.constant 0 : index
      %c0_16 = arith.constant 0 : index
      %17 = vector.load %arg8[%c0_15, %c0_16] : memref<16x256xf32, #tpu.memory_space<vmem>>, vector<16x256xf32>
      %c0_17 = arith.constant 0 : index
      %c0_18 = arith.constant 0 : index
      %18 = vector.load %arg6[%c0_17, %c0_18] : memref<1x256xf32, #tpu.memory_space<vmem>>, vector<1x256xf32>
      %19 = vector.broadcast %18 : vector<1x256xf32> to vector<16x256xf32>
      %20 = arith.addf %17, %19 : vector<16x256xf32>
      %21 = arith.addf %3, %20 : vector<16x256xf32>
      %c0_19 = arith.constant 0 : index
      %c0_20 = arith.constant 0 : index
      %22 = vector.load %arg7[%c0_19, %c0_20] : memref<16x256xf32, #tpu.memory_space<vmem>>, vector<16x256xf32>
      tpu.vector_store %arg7[%c0_19, %c0_20], %21 {strides = array<i32>} : memref<16x256xf32, #tpu.memory_space<vmem>>, vector<16x256xf32>,
    } else {
    }
    return
  }
  func.func @transform_0(%arg0: i32, %arg1: i32) -> (i32, i32) {
    %c0_i32 = arith.constant 0 : i32
    %c0_i32_0 = arith.constant 0 : i32
    return %arg0, %c0_i32 : i32, i32
  }
  func.func @transform_1(%arg0: i32, %arg1: i32) -> (i32, i32) {
    %c0_i32 = arith.constant 0 : i32
    %c0_i32_0 = arith.constant 0 : i32
    return %c0_i32, %arg1 : i32, i32
  }
  func.func @transform_2(%arg0: i32, %arg1: i32) -> (i32, i32) {
    %c0_i32 = arith.constant 0 : i32
    %c0_i32_0 = arith.constant 0 : i32
    return %c0_i32, %arg1 : i32, i32
  }
  func.func @transform_3(%arg0: i32, %arg1: i32) -> (i32, i32) {
    %c0_i32 = arith.constant 0 : i32
    %c0_i32_0 = arith.constant 0 : i32
    return %arg1, %c0_i32 : i32, i32
  }
  func.func @transform_4(%arg0: i32, %arg1: i32) -> (i32, i32) {
    %c0_i32 = arith.constant 0 : i32
    %c0_i32_0 = arith.constant 0 : i32
    %c0_i32_1 = arith.constant 0 : i32
    return %c0_i32, %c0_i32_0 : i32, i32
  }
  func.func @transform_5(%arg0: i32, %arg1: i32) -> (i32, i32) {
    %c0_i32 = arith.constant 0 : i32
    %c0_i32_0 = arith.constant 0 : i32
    return %arg0, %c0_i32 : i32, i32
  }
}

</mosaic_0001>

<bundles_post_ra>
// kernel: tpu_custom_call.1
= control target key start
LH: loop header
LB: loop body
LE: loop exit
PB: predicated region body
PF: predicated region fallthrough
CT: control target
= control target key end

     0   :  { %10 = vsyncpa [#allocation4], 0  ;;  %s782_s0 = inlined_call_operand.hbm [shape: f32[16,256], index: 0, kind: input, shape index: {}]   ;;  %s783_s1 = inlined_call_operand.hbm [shape: f32[256,256], index: 1, kind: input, shape index: {}]   ;;  %s784_s2 = inlined_call_operand.vmem [shape: f32[1,256], index: 2, kind: input, shape index: {}]   ;;  %s785_s3 = inlined_call_operand.hbm [shape: f32[256,256], index: 3, kind: input, shape index: {}]   ;;  %s786_s4 = inlined_call_operand.vmem [shape: f32[1,256], index: 4, kind: input, shape index: {}]   ;;  %s787_s5 = inlined_call_operand.hbm [shape: f32[16,256], index: 5, kind: output, shape index: {}]  }
   0x1   :  { %11 = vsyncpa [#allocation7], 0 }
   0x2   :  { %12 = vsyncpa [#allocation5], 0  ;;  %s657_s18 = smov [#allocation6]   ;;  %s658_s20 = smov [#allocation3]  }
   0x3   :  { %s30_s19 = sshll.u32 %s657_s18, 4  ;;  %s18_s21 = sshll.u32 %s658_s20, 4  ;;  %s31_s19 = int_to_ptr.vmem [resolvable:$true] %s30_s19  ;;  %s693_s21 = int_to_ptr.vmem [resolvable:$true] %s18_s21 }
   0x4   :  { %s563_s24 = scalar_lea.hbm %s783_s1, 8192 }
   0x5   :  { %p564_p0 = scmp.ne.s32.totalorder %s783_s1, %s563_s24  ;;  %p567_p1 = scmp.lt.u32.totalorder %s563_s24, %s783_s1 }
   0x7   :  { %p569_p2 = pnand %p567_p1, %p564_p0 }
   0x9   :  { %572 = shalt.err (!%p569_p2)
}
   0xa   :  { %s573_s29 = scalar_lea.vmem %s31_s19, 8192  ;;  %p578_p4 = scmp.lt.s32.totalorder %s31_s19, %s31_s19 }
   0xb   :  { %p574_p3 = scmp.ne.s32.totalorder %s31_s19, %s573_s29  ;;  %p579_p5 = scmp.lt.s32.totalorder %s573_s29, %s573_s29 }
   0xd   :  { %p580_p6 = por %p579_p5, %p578_p4 }
   0xf   :  { %p581_p7 = pnand %p580_p6, %p574_p3 }
  0x11   :  { %584 = shalt.err (!%p581_p7)
}
  0x12   :  { %s659_s30 = smov 256   ;;  %s660_s6 = smov 16  }
  0x13   :  { %36 = dma.hbm_to_vmem [thread:$0]  %s783_s1, 8192, %s31_s19, [#allocation7], %s659_s30, %s659_s30, %s660_s6  }
  0x14   :  { %s585_s11 = scalar_lea.hbm %s782_s0, 512 }
  0x15   :  { %p586_p8 = scmp.ne.s32.totalorder %s782_s0, %s585_s11  ;;  %p589_p9 = scmp.lt.u32.totalorder %s585_s11, %s782_s0 }
  0x17   :  { %p591_p10 = pnand %p589_p9, %p586_p8 }
  0x19   :  { %594 = shalt.err (!%p591_p10)
}
  0x1a   :  { %s595_s16 = scalar_lea.vmem %s693_s21, 512  ;;  %p600_p12 = scmp.lt.s32.totalorder %s693_s21, %s693_s21 }
  0x1b   :  { %p596_p11 = scmp.ne.s32.totalorder %s693_s21, %s595_s16  ;;  %p601_p13 = scmp.lt.s32.totalorder %s595_s16, %s595_s16 }
  0x1d   :  { %p602_p0 = por %p601_p13, %p600_p12 }
  0x1f   :  { %p603_p1 = pnand %p602_p0, %p596_p11 }
  0x21   :  { %606 = shalt.err (!%p603_p1)
}
  0x22   :  { %24 = dma.hbm_to_vmem [thread:$0]  %s782_s0, 512, %s693_s21, [#allocation4], %s659_s30, %s659_s30, %s660_s6  }
  0x23   :  { %s661_s18 = smov [#allocation8]   ;;  %s607_s23 = scalar_lea.hbm %s785_s3, 8192 }
  0x24   :  { %s44_s19 = sshll.u32 %s661_s18, 4  ;;  %p608_p2 = scmp.ne.s32.totalorder %s785_s3, %s607_s23  ;;  %s45_s19 = int_to_ptr.vmem [resolvable:$true] %s44_s19 }
  0x25   :  { %p611_p3 = scmp.lt.u32.totalorder %s607_s23, %s785_s3 }
  0x27   :  { %p613_p4 = pnand %p611_p3, %p608_p2 }
  0x29   :  { %616 = shalt.err (!%p613_p4)
}
  0x2a   :  { %s617_s28 = scalar_lea.vmem %s45_s19, 8192  ;;  %p622_p6 = scmp.lt.s32.totalorder %s45_s19, %s45_s19 }
  0x2b   :  { %p618_p5 = scmp.ne.s32.totalorder %s45_s19, %s617_s28  ;;  %p623_p7 = scmp.lt.s32.totalorder %s617_s28, %s617_s28 }
  0x2d   :  { %p624_p8 = por %p623_p7, %p622_p6 }
  0x2f   :  { %p625_p9 = pnand %p624_p8, %p618_p5 }
  0x31   :  { %628 = shalt.err (!%p625_p9)
}
  0x32   :  { %50 = dma.hbm_to_vmem [thread:$0]  %s785_s3, 8192, %s45_s19, [#allocation7], %s659_s30, %s659_s30, %s660_s6  }
  0x33   :  { %651 = dma.done.wait [#allocation4], 512  }
  0x34   :  { %652 = vsyncadd [#allocation4], 4294966784 }
  0x35   :  { %653 = dma.done.wait [#allocation7], 16384  }
  0x36   :  { %654 = vsyncadd [#allocation7], 4294950912  ;;  %v75_v0 = vld [vmem:[#allocation6 + $0x8] sm:$0xff]  ;;  %v77_v1 = vld [vmem:[#allocation6 + $0x18] sm:$0xff] }
  0x37   :  { %v74_v2 = vld [vmem:[#allocation6] sm:$0xff]  ;;  %v429_v3 = vpack.c.bf16 %v77_v1, %v75_v0  ;;  %v76_v4 = vld [vmem:[#allocation6 + $0x10] sm:$0xff]  ;;  %v79_v5 = vld [vmem:[#allocation6 + $0x28] sm:$0xff] }
  0x38   :  { %v81_v6 = vld [vmem:[#allocation6 + $0x38] sm:$0xff]  ;;  %v431_v7 = vpack.c.bf16 %v76_v4, %v74_v2  ;;  %v78_v9 = vld [vmem:[#allocation6 + $0x20] sm:$0xff]  ;;  %v80_v10 = vld [vmem:[#allocation6 + $0x30] sm:$0xff] }
  0x39   :  { %v433_v8 = vpack.c.bf16 %v81_v6, %v79_v5  ;;  %v83_v11 = vld [vmem:[#allocation6 + $0x48] sm:$0xff]  ;;  %430 = vmatprep.subr.bf16.mxu0 %v429_v3  ;;  %v85_v12 = vld [vmem:[#allocation6 + $0x58] sm:$0xff]  ;;  %v435_v13 = vpack.c.bf16 %v80_v10, %v78_v9  ;;  %v82_v15 = vld [vmem:[#allocation6 + $0x40] sm:$0xff] }
  0x3a   :  { %432 = vmatpush1.bf16.msra.mxu0 %v431_v7  ;;  %v437_v14 = vpack.c.bf16 %v85_v12, %v83_v11  ;;  %v84_v16 = vld [vmem:[#allocation6 + $0x50] sm:$0xff]  ;;  %v87_v17 = vld [vmem:[#allocation6 + $0x68] sm:$0xff]  ;;  %v89_v18 = vld [vmem:[#allocation6 + $0x78] sm:$0xff] }
  0x3b   :  { %434 = vmatprep.subr.bf16.mxu0 %v433_v8  ;;  %v439_v19 = vpack.c.bf16 %v84_v16, %v82_v15  ;;  %v441_v20 = vpack.c.bf16 %v89_v18, %v87_v17  ;;  %v86_v21 = vld [vmem:[#allocation6 + $0x60] sm:$0xff]  ;;  %v88_v22 = vld [vmem:[#allocation6 + $0x70] sm:$0xff]  ;;  %v91_v23 = vld [vmem:[#allocation6 + $0x88] sm:$0xff] }
  0x3c   :  { %v93_v24 = vld [vmem:[#allocation6 + $0x98] sm:$0xff]  ;;  %v443_v25 = vpack.c.bf16 %v88_v22, %v86_v21  ;;  %v90_v27 = vld [vmem:[#allocation6 + $0x80] sm:$0xff]  ;;  %v92_v28 = vld [vmem:[#allocation6 + $0x90] sm:$0xff] }
  0x3d   :  { %v445_v26 = vpack.c.bf16 %v93_v24, %v91_v23  ;;  %v95_v29 = vld [vmem:[#allocation6 + $0xa8] sm:$0xff]  ;;  %v97_v30 = vld [vmem:[#allocation6 + $0xb8] sm:$0xff]  ;;  %v447_v31 = vpack.c.bf16 %v92_v28, %v90_v27  ;;  %v94_v33 = vld [vmem:[#allocation6 + $0xa0] sm:$0xff] }
  0x3e   :  { %436 = vmatpush1.bf16.msra.mxu0 %v435_v13  ;;  %v449_v32 = vpack.c.bf16 %v97_v30, %v95_v29  ;;  %v96_v34 = vld [vmem:[#allocation6 + $0xb0] sm:$0xff]  ;;  %v99_v35 = vld [vmem:[#allocation6 + $0xc8] sm:$0xff]  ;;  %v101_v36 = vld [vmem:[#allocation6 + $0xd8] sm:$0xff] }
  0x3f   :  { %438 = vmatprep.subr.bf16.mxu0 %v437_v14  ;;  %v451_v37 = vpack.c.bf16 %v96_v34, %v94_v33  ;;  %v453_v38 = vpack.c.bf16 %v101_v36, %v99_v35  ;;  %v98_v39 = vld [vmem:[#allocation6 + $0xc0] sm:$0xff]  ;;  %v100_v40 = vld [vmem:[#allocation6 + $0xd0] sm:$0xff]  ;;  %v745_v41 = vld [vmem:[#allocation3 + $0x8] sm:$0xff] }
  0x40   :  { %v103_v42 = vld [vmem:[#allocation6 + $0xe8] sm:$0xff]  ;;  %v105_v43 = vld [vmem:[#allocation6 + $0xf8] sm:$0xff]  ;;  %214 = vmatprep.mubr.f32.mxu0 %v745_v41  ;;  %v102_v45 = vld [vmem:[#allocation6 + $0xe0] sm:$0xff]  ;;  %v455_v50 = vpack.c.bf16 %v100_v40, %v98_v39 }
  0x41   :  { %v232_v44 = vld [vmem:[#allocation8 + $0x8] sm:$0xff]  ;;  %v104_v46 = vld [vmem:[#allocation6 + $0xf0] sm:$0xff]  ;;  %v234_v47 = vld [vmem:[#allocation8 + $0x18] sm:$0xff]  ;;  %v457_v56 = vpack.c.bf16 %v105_v43, %v103_v42 }
  0x42   :  { %440 = vmatpush1.bf16.msra.mxu0 %v439_v19  ;;  %v231_v48 = vld [vmem:[#allocation8] sm:$0xff]  ;;  %v233_v49 = vld [vmem:[#allocation8 + $0x10] sm:$0xff]  ;;  %v493_v51 = vpack.c.bf16 %v234_v47, %v232_v44  ;;  %v236_v53 = vld [vmem:[#allocation8 + $0x28] sm:$0xff]  ;;  %v459_v0 = vpack.c.bf16 %v104_v46, %v102_v45 }
  0x43   :  { %442 = vmatprep.subr.bf16.mxu0 %v441_v20  ;;  %v495_v52 = vpack.c.bf16 %v233_v49, %v231_v48  ;;  %v238_v54 = vld [vmem:[#allocation8 + $0x38] sm:$0xff]  ;;  %v235_v55 = vld [vmem:[#allocation8 + $0x20] sm:$0xff]  ;;  %v237_v58 = vld [vmem:[#allocation8 + $0x30] sm:$0xff] }
  0x44   :  { %v497_v57 = vpack.c.bf16 %v238_v54, %v236_v53  ;;  %v240_v59 = vld [vmem:[#allocation8 + $0x48] sm:$0xff]  ;;  %v242_v60 = vld [vmem:[#allocation8 + $0x58] sm:$0xff]  ;;  %494 = vmatprep.subr.bf16.mxu1 %v493_v51  ;;  %v499_v63 = vpack.c.bf16 %v237_v58, %v235_v55  ;;  %v106_v1 = vld [vmem:[#allocation6 + $0x100] sm:$0xff] }
  0x45   :  { %v107_v61 = vld [vmem:[#allocation6 + $0x108] sm:$0xff]  ;;  %v109_v62 = vld [vmem:[#allocation6 + $0x118] sm:$0xff]  ;;  %496 = vmatpush1.bf16.msra.mxu1 %v495_v52  ;;  %v501_v2 = vpack.c.bf16 %v242_v60, %v240_v59  ;;  %v239_v3 = vld [vmem:[#allocation8 + $0x40] sm:$0xff] }
  0x46   :  { %444 = vmatpush1.bf16.msra.mxu0 %v443_v25  ;;  %498 = vmatprep.subr.bf16.mxu1 %v497_v57  ;;  %v241_v4 = vld [vmem:[#allocation8 + $0x50] sm:$0xff]  ;;  %v461_v5 = vpack.c.bf16 %v109_v62, %v107_v61  ;;  %v244_v7 = vld [vmem:[#allocation8 + $0x68] sm:$0xff]  ;;  %v246_v8 = vld [vmem:[#allocation8 + $0x78] sm:$0xff] }
  0x47   :  { %446 = vmatprep.subr.bf16.mxu0 %v445_v26  ;;  %v108_v6 = vld [vmem:[#allocation6 + $0x110] sm:$0xff]  ;;  %v111_v9 = vld [vmem:[#allocation6 + $0x128] sm:$0xff]  ;;  %v113_v10 = vld [vmem:[#allocation6 + $0x138] sm:$0xff]  ;;  %v503_v11 = vpack.c.bf16 %v241_v4, %v239_v3  ;;  %v505_v14 = vpack.c.bf16 %v246_v8, %v244_v7 }
  0x48   :  { %v463_v12 = vpack.c.bf16 %v108_v6, %v106_v1  ;;  %v110_v13 = vld [vmem:[#allocation6 + $0x120] sm:$0xff]  ;;  %v245_v16 = vld [vmem:[#allocation8 + $0x70] sm:$0xff]  ;;  %v465_v17 = vpack.c.bf16 %v113_v10, %v111_v9  ;;  %v248_v19 = vld [vmem:[#allocation8 + $0x88] sm:$0xff] }
  0x49   :  { %500 = vmatpush1.bf16.msra.mxu1 %v499_v63  ;;  %v243_v15 = vld [vmem:[#allocation8 + $0x60] sm:$0xff]  ;;  %v112_v18 = vld [vmem:[#allocation6 + $0x130] sm:$0xff]  ;;  %v250_v20 = vld [vmem:[#allocation8 + $0x98] sm:$0xff] }
  0x4a   :  { %448 = vmatpush1.bf16.msra.mxu0 %v447_v31  ;;  %502 = vmatprep.subr.bf16.mxu1 %v501_v2  ;;  %v115_v21 = vld [vmem:[#allocation6 + $0x148] sm:$0xff]  ;;  %v117_v22 = vld [vmem:[#allocation6 + $0x158] sm:$0xff]  ;;  %v507_v23 = vpack.c.bf16 %v245_v16, %v243_v15  ;;  %v467_v24 = vpack.c.bf16 %v112_v18, %v110_v13  ;;  %v114_v25 = vld [vmem:[#allocation6 + $0x140] sm:$0xff]  ;;  %v509_v26 = vpack.c.bf16 %v250_v20, %v248_v19 }
  0x4b   :  { %450 = vmatprep.subr.bf16.mxu0 %v449_v32  ;;  %v247_v27 = vld [vmem:[#allocation8 + $0x80] sm:$0xff]  ;;  %v249_v28 = vld [vmem:[#allocation8 + $0x90] sm:$0xff]  ;;  %v469_v29 = vpack.c.bf16 %v117_v22, %v115_v21  ;;  %v252_v31 = vld [vmem:[#allocation8 + $0xa8] sm:$0xff] }
  0x4c   :  { %v116_v30 = vld [vmem:[#allocation6 + $0x150] sm:$0xff]  ;;  %v254_v32 = vld [vmem:[#allocation8 + $0xb8] sm:$0xff]  ;;  %v119_v33 = vld [vmem:[#allocation6 + $0x168] sm:$0xff]  ;;  %v511_v35 = vpack.c.bf16 %v249_v28, %v247_v27 }
  0x4d   :  { %504 = vmatpush1.bf16.msra.mxu1 %v503_v11  ;;  %v121_v34 = vld [vmem:[#allocation6 + $0x178] sm:$0xff]  ;;  %v471_v36 = vpack.c.bf16 %v116_v30, %v114_v25  ;;  %v251_v39 = vld [vmem:[#allocation8 + $0xa0] sm:$0xff]  ;;  %v253_v40 = vld [vmem:[#allocation8 + $0xb0] sm:$0xff] }
  0x4e   :  { %452 = vmatpush1.bf16.msra.mxu0 %v451_v37  ;;  %506 = vmatprep.subr.bf16.mxu1 %v505_v14  ;;  %v118_v37 = vld [vmem:[#allocation6 + $0x160] sm:$0xff]  ;;  %v473_v42 = vpack.c.bf16 %v121_v34, %v119_v33  ;;  %v120_v43 = vld [vmem:[#allocation6 + $0x170] sm:$0xff]  ;;  %v256_v44 = vld [vmem:[#allocation8 + $0xc8] sm:$0xff]  ;;  %v515_v48 = vpack.c.bf16 %v253_v40, %v251_v39 }
  0x4f   :  { %454 = vmatprep.subr.bf16.mxu0 %v453_v38  ;;  %v513_v38 = vpack.c.bf16 %v254_v32, %v252_v31  ;;  %v258_v45 = vld [vmem:[#allocation8 + $0xd8] sm:$0xff]  ;;  %v123_v46 = vld [vmem:[#allocation6 + $0x188] sm:$0xff]  ;;  %v475_v49 = vpack.c.bf16 %v120_v43, %v118_v37  ;;  %v255_v52 = vld [vmem:[#allocation8 + $0xc0] sm:$0xff] }
  0x50   :  { %v125_v47 = vld [vmem:[#allocation6 + $0x198] sm:$0xff]  ;;  %v517_v51 = vpack.c.bf16 %v258_v45, %v256_v44  ;;  %v257_v53 = vld [vmem:[#allocation8 + $0xd0] sm:$0xff]  ;;  %v127_v58 = vld [vmem:[#allocation6 + $0x1a8] sm:$0xff] }
  0x51   :  { %508 = vmatpush1.bf16.msra.mxu1 %v507_v23  ;;  %v477_v54 = vpack.c.bf16 %v125_v47, %v123_v46  ;;  %v124_v55 = vld [vmem:[#allocation6 + $0x190] sm:$0xff]  ;;  %v262_v57 = vld [vmem:[#allocation8 + $0xf8] sm:$0xff]  ;;  %v519_v60 = vpack.c.bf16 %v257_v53, %v255_v52  ;;  %v126_v62 = vld [vmem:[#allocation6 + $0x1a0] sm:$0xff] }
  0x52   :  { %456 = vmatpush1.bf16.msra.mxu0 %v455_v50  ;;  %510 = vmatprep.subr.bf16.mxu1 %v509_v26  ;;  %v122_v50 = vld [vmem:[#allocation6 + $0x180] sm:$0xff]  ;;  %v129_v59 = vld [vmem:[#allocation6 + $0x1b8] sm:$0xff]  ;;  %v261_v1 = vld [vmem:[#allocation8 + $0xf0] sm:$0xff] }
  0x53   :  { %458 = vmatprep.subr.bf16.mxu0 %v457_v56  ;;  %v260_v56 = vld [vmem:[#allocation8 + $0xe8] sm:$0xff]  ;;  %v479_v61 = vpack.c.bf16 %v124_v55, %v122_v50  ;;  %v481_v2 = vpack.c.bf16 %v129_v59, %v127_v58  ;;  %v128_v3 = vld [vmem:[#allocation6 + $0x1b0] sm:$0xff]  ;;  %v133_v7 = vld [vmem:[#allocation6 + $0x1d8] sm:$0xff] }
  0x54   :  { %v521_v63 = vpack.c.bf16 %v262_v57, %v260_v56  ;;  %v264_v4 = vld [vmem:[#allocation8 + $0x108] sm:$0xff]  ;;  %v483_v9 = vpack.c.bf16 %v128_v3, %v126_v62  ;;  %v130_v10 = vld [vmem:[#allocation6 + $0x1c0] sm:$0xff]  ;;  %v265_v13 = vld [vmem:[#allocation8 + $0x110] sm:$0xff] }
  0x55   :  { %512 = vmatpush1.bf16.msra.mxu1 %v511_v35  ;;  %v131_v6 = vld [vmem:[#allocation6 + $0x1c8] sm:$0xff]  ;;  %v132_v15 = vld [vmem:[#allocation6 + $0x1d0] sm:$0xff]  ;;  %v137_v19 = vld [vmem:[#allocation6 + $0x1f8] sm:$0xff] }
  0x56   :  { %460 = vmatpush1.bf16.msra.mxu0 %v459_v0  ;;  %514 = vmatprep.subr.bf16.mxu1 %v513_v38  ;;  %v259_v0 = vld [vmem:[#allocation8 + $0xe0] sm:$0xff]  ;;  %v485_v14 = vpack.c.bf16 %v133_v7, %v131_v6  ;;  %v268_v16 = vld [vmem:[#allocation8 + $0x128] sm:$0xff]  ;;  %v487_v21 = vpack.c.bf16 %v132_v15, %v130_v10  ;;  %v269_v25 = vld [vmem:[#allocation8 + $0x130] sm:$0xff]  ;;  %v140_v6 = vlaneseq }
  0x57   :  { %462 = vmatprep.subr.bf16.mxu0 %v461_v5  ;;  %v266_v5 = vld [vmem:[#allocation8 + $0x118] sm:$0xff]  ;;  %v523_v8 = vpack.c.bf16 %v261_v1, %v259_v0  ;;  %v135_v18 = vld [vmem:[#allocation6 + $0x1e8] sm:$0xff]  ;;  %v134_v22 = vld [vmem:[#allocation6 + $0x1e0] sm:$0xff] }
  0x58   :  { %v525_v11 = vpack.c.bf16 %v266_v5, %v264_v4  ;;  %v489_v26 = vpack.c.bf16 %v137_v19, %v135_v18  ;;  %v136_v27 = vld [vmem:[#allocation6 + $0x1f0] sm:$0xff]  ;;  %v272_v28 = vld [vmem:[#allocation8 + $0x148] sm:$0xff]  ;;  %v271_v33 = vld [vmem:[#allocation8 + $0x140] sm:$0xff]  ;;  %v141_v7 = vshrl.u32 %v140_v6, 7 }
  0x59   :  { %516 = vmatpush1.bf16.msra.mxu1 %v515_v48  ;;  %v491_v31 = vpack.c.bf16 %v136_v27, %v134_v22  ;;  %v273_v34 = vld [vmem:[#allocation8 + $0x150] sm:$0xff]  ;;  %v276_v35 = vld [vmem:[#allocation8 + $0x168] sm:$0xff]  ;;  %v748_v38 = vld [vmem:[#allocation3] sm:$0xff] }
  0x5a   :  { %464 = vmatpush1.bf16.msra.mxu0 %v463_v12  ;;  %518 = vmatprep.subr.bf16.mxu1 %v517_v51  ;;  %v263_v12 = vld [vmem:[#allocation8 + $0x100] sm:$0xff]  ;;  %v535_v37 = vpack.c.bf16 %v273_v34, %v271_v33  ;;  %v750_v43 = vld [vmem:[#allocation3 + $0x18] sm:$0xff]  ;;  %v280_v44 = vld [vmem:[#allocation8 + $0x188] sm:$0xff]  ;;  %v142_v10 = vsub.s32 0, %v141_v7 }
  0x5b   :  { %466 = vmatprep.subr.bf16.mxu0 %v465_v17  ;;  %v270_v17 = vld [vmem:[#allocation8 + $0x138] sm:$0xff]  ;;  %v527_v20 = vpack.c.bf16 %v265_v13, %v263_v12  ;;  %v275_v40 = vld [vmem:[#allocation8 + $0x160] sm:$0xff]  ;;  %v754_v47 = vld [vmem:[#allocation3 + $0x10] sm:$0xff] }
  0x5c   :  { %v529_v23 = vpack.c.bf16 %v270_v17, %v268_v16  ;;  %v282_v45 = vld [vmem:[#allocation8 + $0x198] sm:$0xff]  ;;  %v281_v50 = vld [vmem:[#allocation8 + $0x190] sm:$0xff]  ;;  %v284_v51 = vld [vmem:[#allocation8 + $0x1a8] sm:$0xff] }
  0x5d   :  { %520 = vmatpush1.bf16.msra.mxu1 %v519_v60  ;;  %v541_v48 = vpack.c.bf16 %v282_v45, %v280_v44  ;;  %v286_v52 = vld [vmem:[#allocation8 + $0x1b8] sm:$0xff]  ;;  %v283_v55 = vld [vmem:[#allocation8 + $0x1a0] sm:$0xff]  ;;  %v285_v56 = vld [vmem:[#allocation8 + $0x1b0] sm:$0xff] }
  0x5e   :  { %468 = vmatpush1.bf16.msra.mxu0 %v467_v24  ;;  %522 = vmatprep.subr.bf16.mxu1 %v521_v63  ;;  %v267_v24 = vld [vmem:[#allocation8 + $0x120] sm:$0xff]  ;;  %v288_v57 = vld [vmem:[#allocation8 + $0x1c8] sm:$0xff]  ;;  %v290_v58 = vld [vmem:[#allocation8 + $0x1d8] sm:$0xff]  ;;  %v547_v59 = vpack.c.bf16 %v285_v56, %v283_v55 }
  0x5f   :  { %470 = vmatprep.subr.bf16.mxu0 %v469_v29  ;;  %v274_v29 = vld [vmem:[#allocation8 + $0x158] sm:$0xff]  ;;  %v531_v30 = vpack.c.bf16 %v269_v25, %v267_v24  ;;  %v549_v60 = vpack.c.bf16 %v290_v58, %v288_v57  ;;  %v289_v62 = vld [vmem:[#allocation8 + $0x1d0] sm:$0xff]  ;;  %v292_v0 = vld [vmem:[#allocation8 + $0x1e8] sm:$0xff] }
  0x60   :  { %v533_v32 = vpack.c.bf16 %v274_v29, %v272_v28  ;;  %v294_v1 = vld [vmem:[#allocation8 + $0x1f8] sm:$0xff]  ;;  %v291_v3 = vld [vmem:[#allocation8 + $0x1e0] sm:$0xff]  ;;  %v293_v4 = vld [vmem:[#allocation8 + $0x1f0] sm:$0xff] }
  0x61   :  { %524 = vmatpush1.bf16.msra.mxu1 %v523_v8  ;;  %v555_v5 = vpack.c.bf16 %v293_v4, %v291_v3  ;;  %v146_v8 = vsub.s32 1, %v141_v7 }
  0x62   :  { %472 = vmatpush1.bf16.msra.mxu0 %v471_v36  ;;  %526 = vmatprep.subr.bf16.mxu1 %v525_v11  ;;  %v278_v36 = vld [vmem:[#allocation8 + $0x178] sm:$0xff] }
  0x63   :  { %474 = vmatprep.subr.bf16.mxu0 %v473_v42  ;;  %v537_v39 = vpack.c.bf16 %v278_v36, %v276_v35  ;;  %v277_v42 = vld [vmem:[#allocation8 + $0x170] sm:$0xff] }
  0x64   :  { %v539_v46 = vpack.c.bf16 %v277_v42, %v275_v40 }
  0x65   :  { %528 = vmatpush1.bf16.msra.mxu1 %v527_v20 }
  0x66   :  { %476 = vmatpush1.bf16.msra.mxu0 %v475_v49  ;;  %530 = vmatprep.subr.bf16.mxu1 %v529_v23  ;;  %v279_v49 = vld [vmem:[#allocation8 + $0x180] sm:$0xff] }
  0x67   :  { %478 = vmatprep.subr.bf16.mxu0 %v477_v54  ;;  %v543_v53 = vpack.c.bf16 %v281_v50, %v279_v49  ;;  %v545_v54 = vpack.c.bf16 %v286_v52, %v284_v51 }
  0x69   :  { %532 = vmatpush1.bf16.msra.mxu1 %v531_v30 }
  0x6a   :  { %480 = vmatpush1.bf16.msra.mxu0 %v479_v61  ;;  %534 = vmatprep.subr.bf16.mxu1 %v533_v32  ;;  %v287_v61 = vld [vmem:[#allocation8 + $0x1c0] sm:$0xff] }
  0x6b   :  { %482 = vmatprep.subr.bf16.mxu0 %v481_v2  ;;  %v551_v63 = vpack.c.bf16 %v289_v62, %v287_v61  ;;  %v553_v2 = vpack.c.bf16 %v294_v1, %v292_v0 }
  0x6d   :  { %536 = vmatpush1.bf16.msra.mxu1 %v535_v37 }
  0x6e   :  { %484 = vmatpush1.bf16.msra.mxu0 %v483_v9  ;;  %538 = vmatprep.subr.bf16.mxu1 %v537_v39  ;;  %v138_v9 = vld [vmem:[%s784_s2] sm:$0x3]  ;;  %s662_s2 = smov [#allocation9]  }
  0x6f   :  { %486 = vmatprep.subr.bf16.mxu0 %v485_v14  ;;  %v147_v11 = vrot.slane %v138_v9, %v146_v8  ;;  %v143_v12 = vrot.slane %v138_v9, %v142_v10  ;;  %s416_s9 = sshll.u32 %s662_s2, 4  ;;  %s417_s9 = int_to_ptr.vmem [resolvable:$true] %s416_s9 }
  0x70   :  { %p634_p11 = scmp.lt.s32.totalorder %s417_s9, %s417_s9 }
  0x71   :  { %540 = vmatpush1.bf16.msra.mxu1 %v539_v46 }
  0x72   :  { %488 = vmatpush1.bf16.msra.mxu0 %v487_v21  ;;  %542 = vmatprep.subr.bf16.mxu1 %v541_v48  ;;  %v387_v21 = vld [vmem:[%s786_s4] sm:$0x3]  ;;  %s629_s4 = scalar_lea.vmem %s417_s9, 512 }
  0x73   :  { %490 = vmatprep.subr.bf16.mxu0 %v489_v26  ;;  %v392_v22 = vrot.slane %v387_v21, %v142_v10  ;;  %v396_v23 = vrot.slane %v387_v21, %v146_v8  ;;  %p630_p10 = scmp.ne.s32.totalorder %s417_s9, %s629_s4  ;;  %p635_p12 = scmp.lt.s32.totalorder %s629_s4, %s629_s4 }
  0x75   :  { %544 = vmatpush1.bf16.msra.mxu1 %v543_v53  ;;  %p636_p13 = por %p635_p12, %p634_p11 }
  0x76   :  { %492 = vmatpush1.bf16.msra.mxu0 %v491_v31  ;;  %546 = vmatprep.subr.bf16.mxu1 %v545_v54 }
  0x77   :  { %p637_p0 = pnand %p636_p13, %p630_p10 }
  0x79   :  { %215 = vmatmul.mubr.f32.vlgmr.msra.gmra.mrb[0].mxu0 %v748_v38  ;;  %548 = vmatpush1.bf16.msra.mxu1 %v547_v59 }
  0x7a   :  { %220 = vmatprep.mubr.f32.mxu0 %v750_v43  ;;  %550 = vmatprep.subr.bf16.mxu1 %v549_v60 }
  0x7d   :  { %221 = vmatmul.mubr.f32.gmra.mrb[2].mxu0 %v754_v47  ;;  %552 = vmatpush1.bf16.msra.mxu1 %v551_v63 }
  0x7e   :  { %554 = vmatprep.subr.bf16.mxu1 %v553_v2 }
  0x81   :  { %556 = vmatpush1.bf16.msra.mxu1 %v555_v5 }
 0x14c   :  { %v216_v13 = vpop.f32.mrb[0].mxu0 }
 0x14d   :  { %v218_v14 = vpop.f32.mrb[1].mxu0  ;;  %v217_v16 = vadd.f32 %v216_v13, %v143_v12 }
 0x14e   :  { %v219_v15 = vadd.f32 %v218_v14, %v147_v11 }
 0x150   :  { %v222_v17 = vpop.f32.mrb[2].mxu0  ;;  %359 = vmatprep.mubr.f32.mxu1 %v219_v15 }
 0x151   :  { %v224_v18 = vpop.f32.mrb[3].mxu0  ;;  %360 = vmatmul.mubr.f32.vlgmr.msra.gmra.mrb[0].mxu1 %v217_v16  ;;  %v223_v20 = vadd.f32 %v222_v17, %v143_v12 }
 0x152   :  { %v225_v19 = vadd.f32 %v224_v18, %v147_v11 }
 0x154   :  { %365 = vmatprep.mubr.f32.mxu1 %v225_v19 }
 0x155   :  { %366 = vmatmul.mubr.f32.gmra.mrb[2].mxu1 %v223_v20 }
 0x224   :  { %v361_v24 = vpop.f32.mrb[0].mxu1 }
 0x225   :  { %v399_v25 = vadd.f32 %v392_v22, %v361_v24  ;;  %v363_v26 = vpop.f32.mrb[1].mxu1 }
 0x226   :  { %v400_v27 = vadd.f32 %v396_v23, %v363_v26 }
 0x227   :  { %v403_v28 = vadd.f32 %v399_v25, %v748_v38 }
 0x228   :  { %v404_v29 = vadd.f32 %v400_v27, %v745_v41  ;;  %v367_v30 = vpop.f32.mrb[2].mxu1 }
 0x229   :  { %407 = vst [vmem:[#allocation9] sm:$0xff] %v403_v28  ;;  %v401_v31 = vadd.f32 %v392_v22, %v367_v30  ;;  %v369_v32 = vpop.f32.mrb[3].mxu1 }
 0x22a   :  { %408 = vst [vmem:[#allocation9 + $0x8] sm:$0xff] %v404_v29  ;;  %v402_v33 = vadd.f32 %v396_v23, %v369_v32 }
 0x22b   :  { %v405_v34 = vadd.f32 %v401_v31, %v754_v47 }
 0x22c   :  { %v406_v35 = vadd.f32 %v402_v33, %v750_v43 }
 0x22d   :  { %409 = vst [vmem:[#allocation9 + $0x10] sm:$0xff] %v405_v34 }
 0x22e   :  { %410 = vst [vmem:[#allocation9 + $0x18] sm:$0xff] %v406_v35 }
 0x22f   :  { %640 = shalt.err (!%p637_p0)
}
 0x230   :  { %s641_s12 = scalar_lea.hbm %s787_s5, 512 }
 0x231   :  { %p642_p1 = scmp.ne.s32.totalorder %s787_s5, %s641_s12  ;;  %p645_p2 = scmp.lt.u32.totalorder %s641_s12, %s787_s5 }
 0x233   :  { %p647_p3 = pnand %p645_p2, %p642_p1 }
 0x235   :  { %650 = shalt.err (!%p647_p3)
}
 0x236   :  { %422 = dma.vmem_to_hbm [thread:$0]  %s417_s9, 512, %s787_s5, [#allocation5], %s659_s30, %s659_s30, %s660_s6  }
 0x237   :  { %655 = dma.done.wait [#allocation5], 512  }
 0x238   :  { %656 = vsyncadd [#allocation5], 4294966784 }
 0x239   :  { %426 = vsyncpa [#allocation4], 1 }
 0x23a   :  { %427 = vsyncpa [#allocation7], 1 }
 0x23b   :  { %428 = vsyncpa [#allocation5], 1 }

// kernel: tpu_custom_call.1
= control target key start
LH: loop header
LB: loop body
LE: loop exit
PB: predicated region body
PF: predicated region fallthrough
CT: control target
= control target key end

     0   :  { %10 = vsyncpa [#allocation4], 0  ;;  %s782_s0 = inlined_call_operand.hbm [shape: f32[16,256], index: 0, kind: input, shape index: {}]   ;;  %s783_s1 = inlined_call_operand.hbm [shape: f32[256,256], index: 1, kind: input, shape index: {}]   ;;  %s784_s2 = inlined_call_operand.vmem [shape: f32[1,256], index: 2, kind: input, shape index: {}]   ;;  %s785_s3 = inlined_call_operand.hbm [shape: f32[256,256], index: 3, kind: input, shape index: {}]   ;;  %s786_s4 = inlined_call_operand.vmem [shape: f32[1,256], index: 4, kind: input, shape index: {}]   ;;  %s787_s5 = inlined_call_operand.hbm [shape: f32[16,256], index: 5, kind: output, shape index: {}]  }
   0x1   :  { %11 = vsyncpa [#allocation7], 0 }
   0x2   :  { %12 = vsyncpa [#allocation5], 0  ;;  %s657_s18 = smov [#allocation6]   ;;  %s658_s20 = smov [#allocation3]  }
   0x3   :  { %s30_s19 = sshll.u32 %s657_s18, 4  ;;  %s18_s21 = sshll.u32 %s658_s20, 4  ;;  %s31_s19 = int_to_ptr.vmem [resolvable:$true] %s30_s19  ;;  %s693_s21 = int_to_ptr.vmem [resolvable:$true] %s18_s21 }
   0x4   :  { %s563_s24 = scalar_lea.hbm %s783_s1, 8192 }
   0x5   :  { %p564_p0 = scmp.ne.s32.totalorder %s783_s1, %s563_s24  ;;  %p567_p1 = scmp.lt.u32.totalorder %s563_s24, %s783_s1 }
   0x7   :  { %p569_p2 = pnand %p567_p1, %p564_p0 }
   0x9   :  { %572 = shalt.err (!%p569_p2)
}
   0xa   :  { %s573_s29 = scalar_lea.vmem %s31_s19, 8192  ;;  %p578_p4 = scmp.lt.s32.totalorder %s31_s19, %s31_s19 }
   0xb   :  { %p574_p3 = scmp.ne.s32.totalorder %s31_s19, %s573_s29  ;;  %p579_p5 = scmp.lt.s32.totalorder %s573_s29, %s573_s29 }
   0xd   :  { %p580_p6 = por %p579_p5, %p578_p4 }
   0xf   :  { %p581_p7 = pnand %p580_p6, %p574_p3 }
  0x11   :  { %584 = shalt.err (!%p581_p7)
}
  0x12   :  { %s659_s30 = smov 256   ;;  %s660_s6 = smov 16  }
  0x13   :  { %36 = dma.hbm_to_vmem [thread:$0]  %s783_s1, 8192, %s31_s19, [#allocation7], %s659_s30, %s659_s30, %s660_s6  }
  0x14   :  { %s585_s11 = scalar_lea.hbm %s782_s0, 512 }
  0x15   :  { %p586_p8 = scmp.ne.s32.totalorder %s782_s0, %s585_s11  ;;  %p589_p9 = scmp.lt.u32.totalorder %s585_s11, %s782_s0 }
  0x17   :  { %p591_p10 = pnand %p589_p9, %p586_p8 }
  0x19   :  { %594 = shalt.err (!%p591_p10)
}
  0x1a   :  { %s595_s16 = scalar_lea.vmem %s693_s21, 512  ;;  %p600_p12 = scmp.lt.s32.totalorder %s693_s21, %s693_s21 }
  0x1b   :  { %p596_p11 = scmp.ne.s32.totalorder %s693_s21, %s595_s16  ;;  %p601_p13 = scmp.lt.s32.totalorder %s595_s16, %s595_s16 }
  0x1d   :  { %p602_p0 = por %p601_p13, %p600_p12 }
  0x1f   :  { %p603_p1 = pnand %p602_p0, %p596_p11 }
  0x21   :  { %606 = shalt.err (!%p603_p1)
}
  0x22   :  { %24 = dma.hbm_to_vmem [thread:$0]  %s782_s0, 512, %s693_s21, [#allocation4], %s659_s30, %s659_s30, %s660_s6  }
  0x23   :  { %s661_s18 = smov [#allocation8]   ;;  %s607_s23 = scalar_lea.hbm %s785_s3, 8192 }
  0x24   :  { %s44_s19 = sshll.u32 %s661_s18, 4  ;;  %p608_p2 = scmp.ne.s32.totalorder %s785_s3, %s607_s23  ;;  %s45_s19 = int_to_ptr.vmem [resolvable:$true] %s44_s19 }
  0x25   :  { %p611_p3 = scmp.lt.u32.totalorder %s607_s23, %s785_s3 }
  0x27   :  { %p613_p4 = pnand %p611_p3, %p608_p2 }
  0x29   :  { %616 = shalt.err (!%p613_p4)
}
  0x2a   :  { %s617_s28 = scalar_lea.vmem %s45_s19, 8192  ;;  %p622_p6 = scmp.lt.s32.totalorder %s45_s19, %s45_s19 }
  0x2b   :  { %p618_p5 = scmp.ne.s32.totalorder %s45_s19, %s617_s28  ;;  %p623_p7 = scmp.lt.s32.totalorder %s617_s28, %s617_s28 }
  0x2d   :  { %p624_p8 = por %p623_p7, %p622_p6 }
  0x2f   :  { %p625_p9 = pnand %p624_p8, %p618_p5 }
  0x31   :  { %628 = shalt.err (!%p625_p9)
}
  0x32   :  { %50 = dma.hbm_to_vmem [thread:$0]  %s785_s3, 8192, %s45_s19, [#allocation7], %s659_s30, %s659_s30, %s660_s6  }
  0x33   :  { %651 = dma.done.wait [#allocation4], 512  }
  0x34   :  { %652 = vsyncadd [#allocation4], 4294966784 }
  0x35   :  { %653 = dma.done.wait [#allocation7], 16384  }
  0x36   :  { %654 = vsyncadd [#allocation7], 4294950912  ;;  %v75_v0 = vld [vmem:[#allocation6 + $0x8] sm:$0xff]  ;;  %v77_v1 = vld [vmem:[#allocation6 + $0x18] sm:$0xff] }
  0x37   :  { %v74_v2 = vld [vmem:[#allocation6] sm:$0xff]  ;;  %v429_v3 = vpack.c.bf16 %v77_v1, %v75_v0  ;;  %v76_v4 = vld [vmem:[#allocation6 + $0x10] sm:$0xff]  ;;  %v79_v5 = vld [vmem:[#allocation6 + $0x28] sm:$0xff] }
  0x38   :  { %v81_v6 = vld [vmem:[#allocation6 + $0x38] sm:$0xff]  ;;  %v431_v7 = vpack.c.bf16 %v76_v4, %v74_v2  ;;  %v78_v9 = vld [vmem:[#allocation6 + $0x20] sm:$0xff]  ;;  %v80_v10 = vld [vmem:[#allocation6 + $0x30] sm:$0xff] }
  0x39   :  { %v433_v8 = vpack.c.bf16 %v81_v6, %v79_v5  ;;  %v83_v11 = vld [vmem:[#allocation6 + $0x48] sm:$0xff]  ;;  %430 = vmatprep.subr.bf16.mxu0 %v429_v3  ;;  %v85_v12 = vld [vmem:[#allocation6 + $0x58] sm:$0xff]  ;;  %v435_v13 = vpack.c.bf16 %v80_v10, %v78_v9  ;;  %v82_v15 = vld [vmem:[#allocation6 + $0x40] sm:$0xff] }
  0x3a   :  { %432 = vmatpush1.bf16.msra.mxu0 %v431_v7  ;;  %v437_v14 = vpack.c.bf16 %v85_v12, %v83_v11  ;;  %v84_v16 = vld [vmem:[#allocation6 + $0x50] sm:$0xff]  ;;  %v87_v17 = vld [vmem:[#allocation6 + $0x68] sm:$0xff]  ;;  %v89_v18 = vld [vmem:[#allocation6 + $0x78] sm:$0xff] }
  0x3b   :  { %434 = vmatprep.subr.bf16.mxu0 %v433_v8  ;;  %v439_v19 = vpack.c.bf16 %v84_v16, %v82_v15  ;;  %v441_v20 = vpack.c.bf16 %v89_v18, %v87_v17  ;;  %v86_v21 = vld [vmem:[#allocation6 + $0x60] sm:$0xff]  ;;  %v88_v22 = vld [vmem:[#allocation6 + $0x70] sm:$0xff]  ;;  %v91_v23 = vld [vmem:[#allocation6 + $0x88] sm:$0xff] }
  0x3c   :  { %v93_v24 = vld [vmem:[#allocation6 + $0x98] sm:$0xff]  ;;  %v443_v25 = vpack.c.bf16 %v88_v22, %v86_v21  ;;  %v90_v27 = vld [vmem:[#allocation6 + $0x80] sm:$0xff]  ;;  %v92_v28 = vld [vmem:[#allocation6 + $0x90] sm:$0xff] }
  0x3d   :  { %v445_v26 = vpack.c.bf16 %v93_v24, %v91_v23  ;;  %v95_v29 = vld [vmem:[#allocation6 + $0xa8] sm:$0xff]  ;;  %v97_v30 = vld [vmem:[#allocation6 + $0xb8] sm:$0xff]  ;;  %v447_v31 = vpack.c.bf16 %v92_v28, %v90_v27  ;;  %v94_v33 = vld [vmem:[#allocation6 + $0xa0] sm:$0xff] }
  0x3e   :  { %436 = vmatpush1.bf16.msra.mxu0 %v435_v13  ;;  %v449_v32 = vpack.c.bf16 %v97_v30, %v95_v29  ;;  %v96_v34 = vld [vmem:[#allocation6 + $0xb0] sm:$0xff]  ;;  %v99_v35 = vld [vmem:[#allocation6 + $0xc8] sm:$0xff]  ;;  %v101_v36 = vld [vmem:[#allocation6 + $0xd8] sm:$0xff] }
  0x3f   :  { %438 = vmatprep.subr.bf16.mxu0 %v437_v14  ;;  %v451_v37 = vpack.c.bf16 %v96_v34, %v94_v33  ;;  %v453_v38 = vpack.c.bf16 %v101_v36, %v99_v35  ;;  %v98_v39 = vld [vmem:[#allocation6 + $0xc0] sm:$0xff]  ;;  %v100_v40 = vld [vmem:[#allocation6 + $0xd0] sm:$0xff]  ;;  %v745_v41 = vld [vmem:[#allocation3 + $0x8] sm:$0xff] }
  0x40   :  { %v103_v42 = vld [vmem:[#allocation6 + $0xe8] sm:$0xff]  ;;  %v105_v43 = vld [vmem:[#allocation6 + $0xf8] sm:$0xff]  ;;  %214 = vmatprep.mubr.f32.mxu0 %v745_v41  ;;  %v102_v45 = vld [vmem:[#allocation6 + $0xe0] sm:$0xff]  ;;  %v455_v50 = vpack.c.bf16 %v100_v40, %v98_v39 }
  0x41   :  { %v232_v44 = vld [vmem:[#allocation8 + $0x8] sm:$0xff]  ;;  %v104_v46 = vld [vmem:[#allocation6 + $0xf0] sm:$0xff]  ;;  %v234_v47 = vld [vmem:[#allocation8 + $0x18] sm:$0xff]  ;;  %v457_v56 = vpack.c.bf16 %v105_v43, %v103_v42 }
  0x42   :  { %440 = vmatpush1.bf16.msra.mxu0 %v439_v19  ;;  %v231_v48 = vld [vmem:[#allocation8] sm:$0xff]  ;;  %v233_v49 = vld [vmem:[#allocation8 + $0x10] sm:$0xff]  ;;  %v493_v51 = vpack.c.bf16 %v234_v47, %v232_v44  ;;  %v236_v53 = vld [vmem:[#allocation8 + $0x28] sm:$0xff]  ;;  %v459_v0 = vpack.c.bf16 %v104_v46, %v102_v45 }
  0x43   :  { %442 = vmatprep.subr.bf16.mxu0 %v441_v20  ;;  %v495_v52 = vpack.c.bf16 %v233_v49, %v231_v48  ;;  %v238_v54 = vld [vmem:[#allocation8 + $0x38] sm:$0xff]  ;;  %v235_v55 = vld [vmem:[#allocation8 + $0x20] sm:$0xff]  ;;  %v237_v58 = vld [vmem:[#allocation8 + $0x30] sm:$0xff] }
  0x44   :  { %v497_v57 = vpack.c.bf16 %v238_v54, %v236_v53  ;;  %v240_v59 = vld [vmem:[#allocation8 + $0x48] sm:$0xff]  ;;  %v242_v60 = vld [vmem:[#allocation8 + $0x58] sm:$0xff]  ;;  %494 = vmatprep.subr.bf16.mxu1 %v493_v51  ;;  %v499_v63 = vpack.c.bf16 %v237_v58, %v235_v55  ;;  %v106_v1 = vld [vmem:[#allocation6 + $0x100] sm:$0xff] }
  0x45   :  { %v107_v61 = vld [vmem:[#allocation6 + $0x108] sm:$0xff]  ;;  %v109_v62 = vld [vmem:[#allocation6 + $0x118] sm:$0xff]  ;;  %496 = vmatpush1.bf16.msra.mxu1 %v495_v52  ;;  %v501_v2 = vpack.c.bf16 %v242_v60, %v240_v59  ;;  %v239_v3 = vld [vmem:[#allocation8 + $0x40] sm:$0xff] }
  0x46   :  { %444 = vmatpush1.bf16.msra.mxu0 %v443_v25  ;;  %498 = vmatprep.subr.bf16.mxu1 %v497_v57  ;;  %v241_v4 = vld [vmem:[#allocation8 + $0x50] sm:$0xff]  ;;  %v461_v5 = vpack.c.bf16 %v109_v62, %v107_v61  ;;  %v244_v7 = vld [vmem:[#allocation8 + $0x68] sm:$0xff]  ;;  %v246_v8 = vld [vmem:[#allocation8 + $0x78] sm:$0xff] }
  0x47   :  { %446 = vmatprep.subr.bf16.mxu0 %v445_v26  ;;  %v108_v6 = vld [vmem:[#allocation6 + $0x110] sm:$0xff]  ;;  %v111_v9 = vld [vmem:[#allocation6 + $0x128] sm:$0xff]  ;;  %v113_v10 = vld [vmem:[#allocation6 + $0x138] sm:$0xff]  ;;  %v503_v11 = vpack.c.bf16 %v241_v4, %v239_v3  ;;  %v505_v14 = vpack.c.bf16 %v246_v8, %v244_v7 }
  0x48   :  { %v463_v12 = vpack.c.bf16 %v108_v6, %v106_v1  ;;  %v110_v13 = vld [vmem:[#allocation6 + $0x120] sm:$0xff]  ;;  %v245_v16 = vld [vmem:[#allocation8 + $0x70] sm:$0xff]  ;;  %v465_v17 = vpack.c.bf16 %v113_v10, %v111_v9  ;;  %v248_v19 = vld [vmem:[#allocation8 + $0x88] sm:$0xff] }
  0x49   :  { %500 = vmatpush1.bf16.msra.mxu1 %v499_v63  ;;  %v243_v15 = vld [vmem:[#allocation8 + $0x60] sm:$0xff]  ;;  %v112_v18 = vld [vmem:[#allocation6 + $0x130] sm:$0xff]  ;;  %v250_v20 = vld [vmem:[#allocation8 + $0x98] sm:$0xff] }
  0x4a   :  { %448 = vmatpush1.bf16.msra.mxu0 %v447_v31  ;;  %502 = vmatprep.subr.bf16.mxu1 %v501_v2  ;;  %v115_v21 = vld [vmem:[#allocation6 + $0x148] sm:$0xff]  ;;  %v117_v22 = vld [vmem:[#allocation6 + $0x158] sm:$0xff]  ;;  %v507_v23 = vpack.c.bf16 %v245_v16, %v243_v15  ;;  %v467_v24 = vpack.c.bf16 %v112_v18, %v110_v13  ;;  %v114_v25 = vld [vmem:[#allocation6 + $0x140] sm:$0xff]  ;;  %v509_v26 = vpack.c.bf16 %v250_v20, %v248_v19 }
  0x4b   :  { %450 = vmatprep.subr.bf16.mxu0 %v449_v32  ;;  %v247_v27 = vld [vmem:[#allocation8 + $0x80] sm:$0xff]  ;;  %v249_v28 = vld [vmem:[#allocation8 + $0x90] sm:$0xff]  ;;  %v469_v29 = vpack.c.bf16 %v117_v22, %v115_v21  ;;  %v252_v31 = vld [vmem:[#allocation8 + $0xa8] sm:$0xff] }
  0x4c   :  { %v116_v30 = vld [vmem:[#allocation6 + $0x150] sm:$0xff]  ;;  %v254_v32 = vld [vmem:[#allocation8 + $0xb8] sm:$0xff]  ;;  %v119_v33 = vld [vmem:[#allocation6 + $0x168] sm:$0xff]  ;;  %v511_v35 = vpack.c.bf16 %v249_v28, %v247_v27 }
  0x4d   :  { %504 = vmatpush1.bf16.msra.mxu1 %v503_v11  ;;  %v121_v34 = vld [vmem:[#allocation6 + $0x178] sm:$0xff]  ;;  %v471_v36 = vpack.c.bf16 %v116_v30, %v114_v25  ;;  %v251_v39 = vld [vmem:[#allocation8 + $0xa0] sm:$0xff]  ;;  %v253_v40 = vld [vmem:[#allocation8 + $0xb0] sm:$0xff] }
  0x4e   :  { %452 = vmatpush1.bf16.msra.mxu0 %v451_v37  ;;  %506 = vmatprep.subr.bf16.mxu1 %v505_v14  ;;  %v118_v37 = vld [vmem:[#allocation6 + $0x160] sm:$0xff]  ;;  %v473_v42 = vpack.c.bf16 %v121_v34, %v119_v33  ;;  %v120_v43 = vld [vmem:[#allocation6 + $0x170] sm:$0xff]  ;;  %v256_v44 = vld [vmem:[#allocation8 + $0xc8] sm:$0xff]  ;;  %v515_v48 = vpack.c.bf16 %v253_v40, %v251_v39 }
  0x4f   :  { %454 = vmatprep.subr.bf16.mxu0 %v453_v38  ;;  %v513_v38 = vpack.c.bf16 %v254_v32, %v252_v31  ;;  %v258_v45 = vld [vmem:[#allocation8 + $0xd8] sm:$0xff]  ;;  %v123_v46 = vld [vmem:[#allocation6 + $0x188] sm:$0xff]  ;;  %v475_v49 = vpack.c.bf16 %v120_v43, %v118_v37  ;;  %v255_v52 = vld [vmem:[#allocation8 + $0xc0] sm:$0xff] }
  0x50   :  { %v125_v47 = vld [vmem:[#allocation6 + $0x198] sm:$0xff]  ;;  %v517_v51 = vpack.c.bf16 %v258_v45, %v256_v44  ;;  %v257_v53 = vld [vmem:[#allocation8 + $0xd0] sm:$0xff]  ;;  %v127_v58 = vld [vmem:[#allocation6 + $0x1a8] sm:$0xff] }
  0x51   :  { %508 = vmatpush1.bf16.msra.mxu1 %v507_v23  ;;  %v477_v54 = vpack.c.bf16 %v125_v47, %v123_v46  ;;  %v124_v55 = vld [vmem:[#allocation6 + $0x190] sm:$0xff]  ;;  %v262_v57 = vld [vmem:[#allocation8 + $0xf8] sm:$0xff]  ;;  %v519_v60 = vpack.c.bf16 %v257_v53, %v255_v52  ;;  %v126_v62 = vld [vmem:[#allocation6 + $0x1a0] sm:$0xff] }
  0x52   :  { %456 = vmatpush1.bf16.msra.mxu0 %v455_v50  ;;  %510 = vmatprep.subr.bf16.mxu1 %v509_v26  ;;  %v122_v50 = vld [vmem:[#allocation6 + $0x180] sm:$0xff]  ;;  %v129_v59 = vld [vmem:[#allocation6 + $0x1b8] sm:$0xff]  ;;  %v261_v1 = vld [vmem:[#allocation8 + $0xf0] sm:$0xff] }
  0x53   :  { %458 = vmatprep.subr.bf16.mxu0 %v457_v56  ;;  %v260_v56 = vld [vmem:[#allocation8 + $0xe8] sm:$0xff]  ;;  %v479_v61 = vpack.c.bf16 %v124_v55, %v122_v50  ;;  %v481_v2 = vpack.c.bf16 %v129_v59, %v127_v58  ;;  %v128_v3 = vld [vmem:[#allocation6 + $0x1b0] sm:$0xff]  ;;  %v133_v7 = vld [vmem:[#allocation6 + $0x1d8] sm:$0xff] }
  0x54   :  { %v521_v63 = vpack.c.bf16 %v262_v57, %v260_v56  ;;  %v264_v4 = vld [vmem:[#allocation8 + $0x108] sm:$0xff]  ;;  %v483_v9 = vpack.c.bf16 %v128_v3, %v126_v62  ;;  %v130_v10 = vld [vmem:[#allocation6 + $0x1c0] sm:$0xff]  ;;  %v265_v13 = vld [vmem:[#allocation8 + $0x110] sm:$0xff] }
  0x55   :  { %512 = vmatpush1.bf16.msra.mxu1 %v511_v35  ;;  %v131_v6 = vld [vmem:[#allocation6 + $0x1c8] sm:$0xff]  ;;  %v132_v15 = vld [vmem:[#allocation6 + $0x1d0] sm:$0xff]  ;;  %v137_v19 = vld [vmem:[#allocation6 + $0x1f8] sm:$0xff] }
  0x56   :  { %460 = vmatpush1.bf16.msra.mxu0 %v459_v0  ;;  %514 = vmatprep.subr.bf16.mxu1 %v513_v38  ;;  %v259_v0 = vld [vmem:[#allocation8 + $0xe0] sm:$0xff]  ;;  %v485_v14 = vpack.c.bf16 %v133_v7, %v131_v6  ;;  %v268_v16 = vld [vmem:[#allocation8 + $0x128] sm:$0xff]  ;;  %v487_v21 = vpack.c.bf16 %v132_v15, %v130_v10  ;;  %v269_v25 = vld [vmem:[#allocation8 + $0x130] sm:$0xff]  ;;  %v140_v6 = vlaneseq }
  0x57   :  { %462 = vmatprep.subr.bf16.mxu0 %v461_v5  ;;  %v266_v5 = vld [vmem:[#allocation8 + $0x118] sm:$0xff]  ;;  %v523_v8 = vpack.c.bf16 %v261_v1, %v259_v0  ;;  %v135_v18 = vld [vmem:[#allocation6 + $0x1e8] sm:$0xff]  ;;  %v134_v22 = vld [vmem:[#allocation6 + $0x1e0] sm:$0xff] }
  0x58   :  { %v525_v11 = vpack.c.bf16 %v266_v5, %v264_v4  ;;  %v489_v26 = vpack.c.bf16 %v137_v19, %v135_v18  ;;  %v136_v27 = vld [vmem:[#allocation6 + $0x1f0] sm:$0xff]  ;;  %v272_v28 = vld [vmem:[#allocation8 + $0x148] sm:$0xff]  ;;  %v271_v33 = vld [vmem:[#allocation8 + $0x140] sm:$0xff]  ;;  %v141_v7 = vshrl.u32 %v140_v6, 7 }
  0x59   :  { %516 = vmatpush1.bf16.msra.mxu1 %v515_v48  ;;  %v491_v31 = vpack.c.bf16 %v136_v27, %v134_v22  ;;  %v273_v34 = vld [vmem:[#allocation8 + $0x150] sm:$0xff]  ;;  %v276_v35 = vld [vmem:[#allocation8 + $0x168] sm:$0xff]  ;;  %v748_v38 = vld [vmem:[#allocation3] sm:$0xff] }
  0x5a   :  { %464 = vmatpush1.bf16.msra.mxu0 %v463_v12  ;;  %518 = vmatprep.subr.bf16.mxu1 %v517_v51  ;;  %v263_v12 = vld [vmem:[#allocation8 + $0x100] sm:$0xff]  ;;  %v535_v37 = vpack.c.bf16 %v273_v34, %v271_v33  ;;  %v750_v43 = vld [vmem:[#allocation3 + $0x18] sm:$0xff]  ;;  %v280_v44 = vld [vmem:[#allocation8 + $0x188] sm:$0xff]  ;;  %v142_v10 = vsub.s32 0, %v141_v7 }
  0x5b   :  { %466 = vmatprep.subr.bf16.mxu0 %v465_v17  ;;  %v270_v17 = vld [vmem:[#allocation8 + $0x138] sm:$0xff]  ;;  %v527_v20 = vpack.c.bf16 %v265_v13, %v263_v12  ;;  %v275_v40 = vld [vmem:[#allocation8 + $0x160] sm:$0xff]  ;;  %v754_v47 = vld [vmem:[#allocation3 + $0x10] sm:$0xff] }
  0x5c   :  { %v529_v23 = vpack.c.bf16 %v270_v17, %v268_v16  ;;  %v282_v45 = vld [vmem:[#allocation8 + $0x198] sm:$0xff]  ;;  %v281_v50 = vld [vmem:[#allocation8 + $0x190] sm:$0xff]  ;;  %v284_v51 = vld [vmem:[#allocation8 + $0x1a8] sm:$0xff] }
  0x5d   :  { %520 = vmatpush1.bf16.msra.mxu1 %v519_v60  ;;  %v541_v48 = vpack.c.bf16 %v282_v45, %v280_v44  ;;  %v286_v52 = vld [vmem:[#allocation8 + $0x1b8] sm:$0xff]  ;;  %v283_v55 = vld [vmem:[#allocation8 + $0x1a0] sm:$0xff]  ;;  %v285_v56 = vld [vmem:[#allocation8 + $0x1b0] sm:$0xff] }
  0x5e   :  { %468 = vmatpush1.bf16.msra.mxu0 %v467_v24  ;;  %522 = vmatprep.subr.bf16.mxu1 %v521_v63  ;;  %v267_v24 = vld [vmem:[#allocation8 + $0x120] sm:$0xff]  ;;  %v288_v57 = vld [vmem:[#allocation8 + $0x1c8] sm:$0xff]  ;;  %v290_v58 = vld [vmem:[#allocation8 + $0x1d8] sm:$0xff]  ;;  %v547_v59 = vpack.c.bf16 %v285_v56, %v283_v55 }
  0x5f   :  { %470 = vmatprep.subr.bf16.mxu0 %v469_v29  ;;  %v274_v29 = vld [vmem:[#allocation8 + $0x158] sm:$0xff]  ;;  %v531_v30 = vpack.c.bf16 %v269_v25, %v267_v24  ;;  %v549_v60 = vpack.c.bf16 %v290_v58, %v288_v57  ;;  %v289_v62 = vld [vmem:[#allocation8 + $0x1d0] sm:$0xff]  ;;  %v292_v0 = vld [vmem:[#allocation8 + $0x1e8] sm:$0xff] }
  0x60   :  { %v533_v32 = vpack.c.bf16 %v274_v29, %v272_v28  ;;  %v294_v1 = vld [vmem:[#allocation8 + $0x1f8] sm:$0xff]  ;;  %v291_v3 = vld [vmem:[#allocation8 + $0x1e0] sm:$0xff]  ;;  %v293_v4 = vld [vmem:[#allocation8 + $0x1f0] sm:$0xff] }
  0x61   :  { %524 = vmatpush1.bf16.msra.mxu1 %v523_v8  ;;  %v555_v5 = vpack.c.bf16 %v293_v4, %v291_v3  ;;  %v146_v8 = vsub.s32 1, %v141_v7 }
  0x62   :  { %472 = vmatpush1.bf16.msra.mxu0 %v471_v36  ;;  %526 = vmatprep.subr.bf16.mxu1 %v525_v11  ;;  %v278_v36 = vld [vmem:[#allocation8 + $0x178] sm:$0xff] }
  0x63   :  { %474 = vmatprep.subr.bf16.mxu0 %v473_v42  ;;  %v537_v39 = vpack.c.bf16 %v278_v36, %v276_v35  ;;  %v277_v42 = vld [vmem:[#allocation8 + $0x170] sm:$0xff] }
  0x64   :  { %v539_v46 = vpack.c.bf16 %v277_v42, %v275_v40 }
  0x65   :  { %528 = vmatpush1.bf16.msra.mxu1 %v527_v20 }
  0x66   :  { %476 = vmatpush1.bf16.msra.mxu0 %v475_v49  ;;  %530 = vmatprep.subr.bf16.mxu1 %v529_v23  ;;  %v279_v49 = vld [vmem:[#allocation8 + $0x180] sm:$0xff] }
  0x67   :  { %478 = vmatprep.subr.bf16.mxu0 %v477_v54  ;;  %v543_v53 = vpack.c.bf16 %v281_v50, %v279_v49  ;;  %v545_v54 = vpack.c.bf16 %v286_v52, %v284_v51 }
  0x69   :  { %532 = vmatpush1.bf16.msra.mxu1 %v531_v30 }
  0x6a   :  { %480 = vmatpush1.bf16.msra.mxu0 %v479_v61  ;;  %534 = vmatprep.subr.bf16.mxu1 %v533_v32  ;;  %v287_v61 = vld [vmem:[#allocation8 + $0x1c0] sm:$0xff] }
  0x6b   :  { %482 = vmatprep.subr.bf16.mxu0 %v481_v2  ;;  %v551_v63 = vpack.c.bf16 %v289_v62, %v287_v61  ;;  %v553_v2 = vpack.c.bf16 %v294_v1, %v292_v0 }
  0x6d   :  { %536 = vmatpush1.bf16.msra.mxu1 %v535_v37 }
  0x6e   :  { %484 = vmatpush1.bf16.msra.mxu0 %v483_v9  ;;  %538 = vmatprep.subr.bf16.mxu1 %v537_v39  ;;  %v138_v9 = vld [vmem:[%s784_s2] sm:$0x3]  ;;  %s662_s2 = smov [#allocation9]  }
  0x6f   :  { %486 = vmatprep.subr.bf16.mxu0 %v485_v14  ;;  %v147_v11 = vrot.slane %v138_v9, %v146_v8  ;;  %v143_v12 = vrot.slane %v138_v9, %v142_v10  ;;  %s416_s9 = sshll.u32 %s662_s2, 4  ;;  %s417_s9 = int_to_ptr.vmem [resolvable:$true] %s416_s9 }
  0x70   :  { %p634_p11 = scmp.lt.s32.totalorder %s417_s9, %s417_s9 }
  0x71   :  { %540 = vmatpush1.bf16.msra.mxu1 %v539_v46 }
  0x72   :  { %488 = vmatpush1.bf16.msra.mxu0 %v487_v21  ;;  %542 = vmatprep.subr.bf16.mxu1 %v541_v48  ;;  %v387_v21 = vld [vmem:[%s786_s4] sm:$0x3]  ;;  %s629_s4 = scalar_lea.vmem %s417_s9, 512 }
  0x73   :  { %490 = vmatprep.subr.bf16.mxu0 %v489_v26  ;;  %v392_v22 = vrot.slane %v387_v21, %v142_v10  ;;  %v396_v23 = vrot.slane %v387_v21, %v146_v8  ;;  %p630_p10 = scmp.ne.s32.totalorder %s417_s9, %s629_s4  ;;  %p635_p12 = scmp.lt.s32.totalorder %s629_s4, %s629_s4 }
  0x75   :  { %544 = vmatpush1.bf16.msra.mxu1 %v543_v53  ;;  %p636_p13 = por %p635_p12, %p634_p11 }
  0x76   :  { %492 = vmatpush1.bf16.msra.mxu0 %v491_v31  ;;  %546 = vmatprep.subr.bf16.mxu1 %v545_v54 }
  0x77   :  { %p637_p0 = pnand %p636_p13, %p630_p10 }
  0x79   :  { %215 = vmatmul.mubr.f32.vlgmr.msra.gmra.mrb[0].mxu0 %v748_v38  ;;  %548 = vmatpush1.bf16.msra.mxu1 %v547_v59 }
  0x7a   :  { %220 = vmatprep.mubr.f32.mxu0 %v750_v43  ;;  %550 = vmatprep.subr.bf16.mxu1 %v549_v60 }
  0x7d   :  { %221 = vmatmul.mubr.f32.gmra.mrb[2].mxu0 %v754_v47  ;;  %552 = vmatpush1.bf16.msra.mxu1 %v551_v63 }
  0x7e   :  { %554 = vmatprep.subr.bf16.mxu1 %v553_v2 }
  0x81   :  { %556 = vmatpush1.bf16.msra.mxu1 %v555_v5 }
 0x14c   :  { %v216_v13 = vpop.f32.mrb[0].mxu0 }
 0x14d   :  { %v218_v14 = vpop.f32.mrb[1].mxu0  ;;  %v217_v16 = vadd.f32 %v216_v13, %v143_v12 }
 0x14e   :  { %v219_v15 = vadd.f32 %v218_v14, %v147_v11 }
 0x150   :  { %v222_v17 = vpop.f32.mrb[2].mxu0  ;;  %359 = vmatprep.mubr.f32.mxu1 %v219_v15 }
 0x151   :  { %v224_v18 = vpop.f32.mrb[3].mxu0  ;;  %360 = vmatmul.mubr.f32.vlgmr.msra.gmra.mrb[0].mxu1 %v217_v16  ;;  %v223_v20 = vadd.f32 %v222_v17, %v143_v12 }
 0x152   :  { %v225_v19 = vadd.f32 %v224_v18, %v147_v11 }
 0x154   :  { %365 = vmatprep.mubr.f32.mxu1 %v225_v19 }
 0x155   :  { %366 = vmatmul.mubr.f32.gmra.mrb[2].mxu1 %v223_v20 }
 0x224   :  { %v361_v24 = vpop.f32.mrb[0].mxu1 }
 0x225   :  { %v399_v25 = vadd.f32 %v392_v22, %v361_v24  ;;  %v363_v26 = vpop.f32.mrb[1].mxu1 }
 0x226   :  { %v400_v27 = vadd.f32 %v396_v23, %v363_v26 }
 0x227   :  { %v403_v28 = vadd.f32 %v399_v25, %v748_v38 }
 0x228   :  { %v404_v29 = vadd.f32 %v400_v27, %v745_v41  ;;  %v367_v30 = vpop.f32.mrb[2].mxu1 }
 0x229   :  { %407 = vst [vmem:[#allocation9] sm:$0xff] %v403_v28  ;;  %v401_v31 = vadd.f32 %v392_v22, %v367_v30  ;;  %v369_v32 = vpop.f32.mrb[3].mxu1 }
 0x22a   :  { %408 = vst [vmem:[#allocation9 + $0x8] sm:$0xff] %v404_v29  ;;  %v402_v33 = vadd.f32 %v396_v23, %v369_v32 }
 0x22b   :  { %v405_v34 = vadd.f32 %v401_v31, %v754_v47 }
 0x22c   :  { %v406_v35 = vadd.f32 %v402_v33, %v750_v43 }
 0x22d   :  { %409 = vst [vmem:[#allocation9 + $0x10] sm:$0xff] %v405_v34 }
 0x22e   :  { %410 = vst [vmem:[#allocation9 + $0x18] sm:$0xff] %v406_v35 }
 0x22f   :  { %640 = shalt.err (!%p637_p0)
}
 0x230   :  { %s641_s12 = scalar_lea.hbm %s787_s5, 512 }
 0x231   :  { %p642_p1 = scmp.ne.s32.totalorder %s787_s5, %s641_s12  ;;  %p645_p2 = scmp.lt.u32.totalorder %s641_s12, %s787_s5 }
 0x233   :  { %p647_p3 = pnand %p645_p2, %p642_p1 }
 0x235   :  { %650 = shalt.err (!%p647_p3)
}
 0x236   :  { %422 = dma.vmem_to_hbm [thread:$0]  %s417_s9, 512, %s787_s5, [#allocation5], %s659_s30, %s659_s30, %s660_s6  }
 0x237   :  { %655 = dma.done.wait [#allocation5], 512  }
 0x238   :  { %656 = vsyncadd [#allocation5], 4294966784 }
 0x239   :  { %426 = vsyncpa [#allocation4], 1 }
 0x23a   :  { %427 = vsyncpa [#allocation7], 1 }
 0x23b   :  { %428 = vsyncpa [#allocation5], 1 }

</bundles_post_ra>
